<compile_context>
chip_gen: v7x
topology: tpu7x:2x2x1
jax: 0.10.0
libtpu: 0.0.40
codegen_flags: <defaults>
</compile_context>

<pallas_src>
from functools import partial

import jax
import jax.numpy as jnp
from jax import lax
from jax.experimental import pallas as pl
from jax.experimental.pallas import tpu as pltpu


def _shared_dw_kernel(x_ref, w_ref, o_ref, xpad_ref, *,
                      k, stride, dilation, pad, H, W, wo, strip):
    # x_ref   : (H, W, C)          unpadded NHWC input, one batch image
    # w_ref   : (k*k, C)           shared depthwise filters tiled to full C
    # o_ref   : (strip, Wo, C)     one output-row strip
    # xpad_ref: (Hp_alloc, Wp, C)  padded staging buffer (persists across strips)
    r = pl.program_id(1)

    # Build the padded image once per batch (first row strip).  The halo (and
    # any over-allocated tail rows for a ragged last strip) stay zero.
    @pl.when(r == 0)
    def _():
        xpad_ref[...] = jnp.zeros_like(xpad_ref)
        xpad_ref[pl.ds(pad, H), pl.ds(pad, W), :] = x_ref[...]

    row0 = pl.multiple_of(r * (strip * stride), strip * stride)

    acc = None  # first tap product initializes the accumulator (no zeros pass)
    for dy in range(k):
        for dx in range(k):
            y0 = dy * dilation
            x0 = dx * dilation
            if stride == 1:
                tap = xpad_ref[pl.ds(row0 + y0, strip), pl.ds(x0, wo), :]
            else:
                # Contiguous span read from the ref, then a static strided
                # slice of the (small) strip-sized value.
                rows_span = (strip - 1) * stride + 1
                cols_span = (wo - 1) * stride + 1
                blk = xpad_ref[pl.ds(row0 + y0, rows_span),
                               pl.ds(x0, cols_span), :]
                tap = lax.slice(blk, (0, 0, 0), blk.shape, (stride, stride, 1))
            w_tap = w_ref[dy * k + dx, :].astype(jnp.float32)   # (C,) lane vector
            contrib = tap.astype(jnp.float32) * w_tap           # bcast over lanes
            acc = contrib if acc is None else acc + contrib
    o_ref[...] = acc.astype(o_ref.dtype)


def shared_depthwise_conv2d_nhwc(x, w, *, t, kernel_size=3, stride=1,
                                 padding=None, dilation=1, row_strip=8):
    """Fused SharedDepthwiseConv2d.forward (bias=False), channels-last.

    x: (N, H, W, C);  w: (C // t, k, k) shared depthwise filters.
    Returns (N, Ho, Wo, C).
    """
    N, H, W, C = x.shape
    k = kernel_size
    assert C % t == 0, "C must be divisible by t (torch.chunk even split)"
    cg = C // t
    assert w.shape == (cg, k, k), w.shape

    if padding is None:
        padding = ((k - 1) * (dilation - 1) + k) // 2
    ho = (H + 2 * padding - dilation * (k - 1) - 1) // stride + 1
    wo = (W + 2 * padding - dilation * (k - 1) - 1) // stride + 1

    # Shared weight -> lane-major (k*k, C) table.  Channel c uses filter c % cg,
    # matching torch.chunk group order.  A few KB, DMA'd once.
    w_tab = jnp.tile(jnp.transpose(w.reshape(cg, k * k)), (1, t))  # (k*k, C)

    strip = max(1, min(row_strip, ho))
    ns = pl.cdiv(ho, strip)
    # Padded staging buffer: enough rows for the last (possibly ragged) strip.
    hp_alloc = max(H + 2 * padding,
                   (ns * strip - 1) * stride + dilation * (k - 1) + 1)
    wp = W + 2 * padding

    kernel = partial(_shared_dw_kernel, k=k, stride=stride, dilation=dilation,
                     pad=padding, H=H, W=W, wo=wo, strip=strip)

    # Raise the scoped-VMEM cap only when the full-image input block needs it;
    # small shapes keep the conservative default (zero compile risk).
    esz = x.dtype.itemsize
    need = (2 * H * W * C + hp_alloc * wp * C + 2 * strip * wo * C) * esz \
        + 2 * k * k * C * 4 + (1 << 20)
    vmem_limit = int(min(need, 100 * 1024 * 1024)) if need > (16 << 20) else None

    return pl.pallas_call(
        kernel,
        out_shape=jax.ShapeDtypeStruct((N, ho, wo, C), x.dtype),
        grid_spec=pltpu.PrefetchScalarGridSpec(
            num_scalar_prefetch=0,
            grid=(N, ns),
            in_specs=[
                # Full NHWC image of batch n; block index is constant across the
                # strip axis -> DMA'd once per batch, reused by every strip.
                pl.BlockSpec((pl.Squeezed(), H, W, C),
                             lambda n, r: (n, 0, 0, 0)),
                # Shared weight table: same block for every grid point.
                pl.BlockSpec((k * k, C), lambda n, r: (0, 0)),
            ],
            out_specs=pl.BlockSpec((pl.Squeezed(), strip, wo, C),
                                   lambda n, r: (n, r, 0, 0)),
            scratch_shapes=[pltpu.VMEM((hp_alloc, wp, C), x.dtype)],
        ),
        compiler_params=pltpu.CompilerParams(
            dimension_semantics=("parallel", "arbitrary"),
            vmem_limit_bytes=vmem_limit,
        ),
    )(x, w_tab)


def shared_depthwise_conv2d(x, w, *, t, kernel_size=3, stride=1, padding=None,
                            dilation=1):
    """Drop-in for SharedDepthwiseConv2d.forward (bias=False), NCHW in/out.

    x: (N, C, H, W); w: (C//t, k, k).  The two transposes below are layout
    plumbing for the lane-dense NHWC kernel — in a real model keep activations
    NHWC end-to-end and call shared_depthwise_conv2d_nhwc directly.
    """
    x_nhwc = jnp.transpose(x, (0, 2, 3, 1))
    out = shared_depthwise_conv2d_nhwc(
        x_nhwc, w, t=t, kernel_size=kernel_size, stride=stride,
        padding=padding, dilation=dilation)
    return jnp.transpose(out, (0, 3, 1, 2))


def _reference(x, w, *, t, stride, padding, dilation):
    """Pure-JAX reference: depthwise conv with filters tiled across groups."""
    C = x.shape[1]
    w_full = jnp.tile(w, (t, 1, 1))[:, None, :, :]  # (C, 1, k, k)
    return jax.lax.conv_general_dilated(
        x, w_full,
        window_strides=(stride, stride),
        padding=((padding, padding), (padding, padding)),
        rhs_dilation=(dilation, dilation),
        dimension_numbers=("NCHW", "OIHW", "NCHW"),
        feature_group_count=C,
    )


if __name__ == "__main__":
    key = jax.random.PRNGKey(0)
    kx, kw = jax.random.split(key)

    N, C, H, W = 2, 4, 16, 16
    t, k, stride, dilation = 2, 3, 1, 1
    pad = ((k - 1) * (dilation - 1) + k) // 2

    x = jax.random.normal(kx, (N, C, H, W), dtype=jnp.float32)
    w = jax.random.normal(kw, (C // t, k, k), dtype=jnp.float32)

    out = shared_depthwise_conv2d(x, w, t=t, kernel_size=k, stride=stride,
                                  dilation=dilation)
    out = jax.block_until_ready(out)

    ref = _reference(x, w, t=t, stride=stride, padding=pad, dilation=dilation)
    assert out.shape == ref.shape and out.dtype == ref.dtype
    assert jnp.allclose(out, ref, atol=1e-4, rtol=1e-4), float(
        jnp.max(jnp.abs(out - ref)))

    print("KERNEL_OK")
</pallas_src>

<mosaic_0001>
module attributes {stable_mosaic.version = 11 : i64} {
  func.func @_shared_dw_kernel(%arg0: i32, %arg1: i32, %arg2: memref<1x16x16x4xf32, #tpu.memory_space<vmem>>, %arg3: memref<9x4xf32, #tpu.memory_space<vmem>>, %arg4: memref<1x8x16x4xf32, #tpu.memory_space<vmem>>, %arg5: memref<18x18x4xf32, #tpu.memory_space<vmem>>) attributes {dimension_semantics = [#tpu.dimension_semantics<parallel>, #tpu.dimension_semantics<arbitrary>], iteration_bounds = array<i64: 2, 2>, scalar_prefetch = 0 : i64, scratch_operands = 1 : i64, tpu.core_type = #tpu.core_type<tc>, window_params = [{transform_indices = @transform_0, window_bounds = array<i64: 1, 16, 16, 4>}, {pipeline_mode = #tpu.pipeline_mode<synchronous>, transform_indices = @transform_1, window_bounds = array<i64: 9, 4>}, {transform_indices = @transform_2, window_bounds = array<i64: 1, 8, 16, 4>}]} {
    %c0_i32 = arith.constant 0 : i32
    %0 = arith.cmpi eq, %arg1, %c0_i32 : i32
    %1 = arith.extui %0 : i1 to i32
    %c0_i32_0 = arith.constant 0 : i32
    %2 = arith.cmpi ne, %1, %c0_i32_0 : i32
    scf.if %2 {
      %cst = arith.constant 0.000000e+00 : f32
      %88 = vector.broadcast %cst : f32 to vector<18x18x4xf32>
      %c0_39 = arith.constant 0 : index
      %c0_40 = arith.constant 0 : index
      %c0_41 = arith.constant 0 : index
      %89 = vector.load %arg5[%c0_39, %c0_40, %c0_41] : memref<18x18x4xf32, #tpu.memory_space<vmem>>, vector<18x18x4xf32>
      tpu.vector_store %arg5[%c0_39, %c0_40, %c0_41], %88 {strides = array<i32>} : memref<18x18x4xf32, #tpu.memory_space<vmem>>, vector<18x18x4xf32>,
      %c0_42 = arith.constant 0 : index
      %c0_43 = arith.constant 0 : index
      %c0_44 = arith.constant 0 : index
      %c0_45 = arith.constant 0 : index
      %90 = vector.load %arg2[%c0_42, %c0_43, %c0_44, %c0_45] : memref<1x16x16x4xf32, #tpu.memory_space<vmem>>, vector<1x16x16x4xf32>
      %91 = vector.shape_cast %90 : vector<1x16x16x4xf32> to vector<16x16x4xf32>
      %c1_46 = arith.constant 1 : index
      %c1_47 = arith.constant 1 : index
      %c0_48 = arith.constant 0 : index
      %92 = vector.load %arg5[%c1_46, %c1_47, %c0_48] : memref<18x18x4xf32, #tpu.memory_space<vmem>>, vector<16x16x4xf32>
      tpu.vector_store %arg5[%c1_46, %c1_47, %c0_48], %91 {strides = array<i32>} : memref<18x18x4xf32, #tpu.memory_space<vmem>>, vector<16x16x4xf32>,
    } else {
    }
    %c8_i32 = arith.constant 8 : i32
    %3 = arith.muli %arg1, %c8_i32 : i32
    %4 = tpu.assume_multiple %3, 8 : i32
    %c0_i32_1 = arith.constant 0 : i32
    %5 = arith.addi %4, %c0_i32_1 : i32
    %6 = arith.index_cast %5 : i32 to index
    %c0 = arith.constant 0 : index
    %c0_2 = arith.constant 0 : index
    %7 = vector.load %arg5[%6, %c0, %c0_2] : memref<18x18x4xf32, #tpu.memory_space<vmem>>, vector<8x16x4xf32>
    %c0_3 = arith.constant 0 : index
    %c0_4 = arith.constant 0 : index
    %8 = vector.load %arg3[%c0_3, %c0_4] : memref<9x4xf32, #tpu.memory_space<vmem>>, vector<1x4xf32>
    %9 = vector.shape_cast %8 : vector<1x4xf32> to vector<4xf32>
    %10 = vector.shape_cast %9 : vector<4xf32> to vector<1x1x4xf32>
    %11 = vector.broadcast %10 : vector<1x1x4xf32> to vector<8x16x4xf32>
    %12 = arith.mulf %7, %11 : vector<8x16x4xf32>
    %c0_i32_5 = arith.constant 0 : i32
    %13 = arith.addi %4, %c0_i32_5 : i32
    %14 = arith.index_cast %13 : i32 to index
    %c1 = arith.constant 1 : index
    %c0_6 = arith.constant 0 : index
    %15 = vector.load %arg5[%14, %c1, %c0_6] : memref<18x18x4xf32, #tpu.memory_space<vmem>>, vector<8x16x4xf32>
    %c1_7 = arith.constant 1 : index
    %c0_8 = arith.constant 0 : index
    %16 = vector.load %arg3[%c1_7, %c0_8] : memref<9x4xf32, #tpu.memory_space<vmem>>, vector<1x4xf32>
    %17 = vector.shape_cast %16 : vector<1x4xf32> to vector<4xf32>
    %18 = vector.shape_cast %17 : vector<4xf32> to vector<1x1x4xf32>
    %19 = vector.broadcast %18 : vector<1x1x4xf32> to vector<8x16x4xf32>
    %20 = arith.mulf %15, %19 : vector<8x16x4xf32>
    %21 = arith.addf %12, %20 : vector<8x16x4xf32>
    %c0_i32_9 = arith.constant 0 : i32
    %22 = arith.addi %4, %c0_i32_9 : i32
    %23 = arith.index_cast %22 : i32 to index
    %c2 = arith.constant 2 : index
    %c0_10 = arith.constant 0 : index
    %24 = vector.load %arg5[%23, %c2, %c0_10] : memref<18x18x4xf32, #tpu.memory_space<vmem>>, vector<8x16x4xf32>
    %c2_11 = arith.constant 2 : index
    %c0_12 = arith.constant 0 : index
    %25 = vector.load %arg3[%c2_11, %c0_12] : memref<9x4xf32, #tpu.memory_space<vmem>>, vector<1x4xf32>
    %26 = vector.shape_cast %25 : vector<1x4xf32> to vector<4xf32>
    %27 = vector.shape_cast %26 : vector<4xf32> to vector<1x1x4xf32>
    %28 = vector.broadcast %27 : vector<1x1x4xf32> to vector<8x16x4xf32>
    %29 = arith.mulf %24, %28 : vector<8x16x4xf32>
    %30 = arith.addf %21, %29 : vector<8x16x4xf32>
    %c1_i32 = arith.constant 1 : i32
    %31 = arith.addi %4, %c1_i32 : i32
    %32 = arith.index_cast %31 : i32 to index
    %c0_13 = arith.constant 0 : index
    %c0_14 = arith.constant 0 : index
    %33 = vector.load %arg5[%32, %c0_13, %c0_14] : memref<18x18x4xf32, #tpu.memory_space<vmem>>, vector<8x16x4xf32>
    %c3 = arith.constant 3 : index
    %c0_15 = arith.constant 0 : index
    %34 = vector.load %arg3[%c3, %c0_15] : memref<9x4xf32, #tpu.memory_space<vmem>>, vector<1x4xf32>
    %35 = vector.shape_cast %34 : vector<1x4xf32> to vector<4xf32>
    %36 = vector.shape_cast %35 : vector<4xf32> to vector<1x1x4xf32>
    %37 = vector.broadcast %36 : vector<1x1x4xf32> to vector<8x16x4xf32>
    %38 = arith.mulf %33, %37 : vector<8x16x4xf32>
    %39 = arith.addf %30, %38 : vector<8x16x4xf32>
    %c1_i32_16 = arith.constant 1 : i32
    %40 = arith.addi %4, %c1_i32_16 : i32
    %41 = arith.index_cast %40 : i32 to index
    %c1_17 = arith.constant 1 : index
    %c0_18 = arith.constant 0 : index
    %42 = vector.load %arg5[%41, %c1_17, %c0_18] : memref<18x18x4xf32, #tpu.memory_space<vmem>>, vector<8x16x4xf32>
    %c4 = arith.constant 4 : index
    %c0_19 = arith.constant 0 : index
    %43 = vector.load %arg3[%c4, %c0_19] : memref<9x4xf32, #tpu.memory_space<vmem>>, vector<1x4xf32>
    %44 = vector.shape_cast %43 : vector<1x4xf32> to vector<4xf32>
    %45 = vector.shape_cast %44 : vector<4xf32> to vector<1x1x4xf32>
    %46 = vector.broadcast %45 : vector<1x1x4xf32> to vector<8x16x4xf32>
    %47 = arith.mulf %42, %46 : vector<8x16x4xf32>
    %48 = arith.addf %39, %47 : vector<8x16x4xf32>
    %c1_i32_20 = arith.constant 1 : i32
    %49 = arith.addi %4, %c1_i32_20 : i32
    %50 = arith.index_cast %49 : i32 to index
    %c2_21 = arith.constant 2 : index
    %c0_22 = arith.constant 0 : index
    %51 = vector.load %arg5[%50, %c2_21, %c0_22] : memref<18x18x4xf32, #tpu.memory_space<vmem>>, vector<8x16x4xf32>
    %c5 = arith.constant 5 : index
    %c0_23 = arith.constant 0 : index
    %52 = vector.load %arg3[%c5, %c0_23] : memref<9x4xf32, #tpu.memory_space<vmem>>, vector<1x4xf32>
    %53 = vector.shape_cast %52 : vector<1x4xf32> to vector<4xf32>
    %54 = vector.shape_cast %53 : vector<4xf32> to vector<1x1x4xf32>
    %55 = vector.broadcast %54 : vector<1x1x4xf32> to vector<8x16x4xf32>
    %56 = arith.mulf %51, %55 : vector<8x16x4xf32>
    %57 = arith.addf %48, %56 : vector<8x16x4xf32>
    %c2_i32 = arith.constant 2 : i32
    %58 = arith.addi %4, %c2_i32 : i32
    %59 = arith.index_cast %58 : i32 to index
    %c0_24 = arith.constant 0 : index
    %c0_25 = arith.constant 0 : index
    %60 = vector.load %arg5[%59, %c0_24, %c0_25] : memref<18x18x4xf32, #tpu.memory_space<vmem>>, vector<8x16x4xf32>
    %c6 = arith.constant 6 : index
    %c0_26 = arith.constant 0 : index
    %61 = vector.load %arg3[%c6, %c0_26] : memref<9x4xf32, #tpu.memory_space<vmem>>, vector<1x4xf32>
    %62 = vector.shape_cast %61 : vector<1x4xf32> to vector<4xf32>
    %63 = vector.shape_cast %62 : vector<4xf32> to vector<1x1x4xf32>
    %64 = vector.broadcast %63 : vector<1x1x4xf32> to vector<8x16x4xf32>
    %65 = arith.mulf %60, %64 : vector<8x16x4xf32>
    %66 = arith.addf %57, %65 : vector<8x16x4xf32>
    %c2_i32_27 = arith.constant 2 : i32
    %67 = arith.addi %4, %c2_i32_27 : i32
    %68 = arith.index_cast %67 : i32 to index
    %c1_28 = arith.constant 1 : index
    %c0_29 = arith.constant 0 : index
    %69 = vector.load %arg5[%68, %c1_28, %c0_29] : memref<18x18x4xf32, #tpu.memory_space<vmem>>, vector<8x16x4xf32>
    %c7 = arith.constant 7 : index
    %c0_30 = arith.constant 0 : index
    %70 = vector.load %arg3[%c7, %c0_30] : memref<9x4xf32, #tpu.memory_space<vmem>>, vector<1x4xf32>
    %71 = vector.shape_cast %70 : vector<1x4xf32> to vector<4xf32>
    %72 = vector.shape_cast %71 : vector<4xf32> to vector<1x1x4xf32>
    %73 = vector.broadcast %72 : vector<1x1x4xf32> to vector<8x16x4xf32>
    %74 = arith.mulf %69, %73 : vector<8x16x4xf32>
    %75 = arith.addf %66, %74 : vector<8x16x4xf32>
    %c2_i32_31 = arith.constant 2 : i32
    %76 = arith.addi %4, %c2_i32_31 : i32
    %77 = arith.index_cast %76 : i32 to index
    %c2_32 = arith.constant 2 : index
    %c0_33 = arith.constant 0 : index
    %78 = vector.load %arg5[%77, %c2_32, %c0_33] : memref<18x18x4xf32, #tpu.memory_space<vmem>>, vector<8x16x4xf32>
    %c8 = arith.constant 8 : index
    %c0_34 = arith.constant 0 : index
    %79 = vector.load %arg3[%c8, %c0_34] : memref<9x4xf32, #tpu.memory_space<vmem>>, vector<1x4xf32>
    %80 = vector.shape_cast %79 : vector<1x4xf32> to vector<4xf32>
    %81 = vector.shape_cast %80 : vector<4xf32> to vector<1x1x4xf32>
    %82 = vector.broadcast %81 : vector<1x1x4xf32> to vector<8x16x4xf32>
    %83 = arith.mulf %78, %82 : vector<8x16x4xf32>
    %84 = arith.addf %75, %83 : vector<8x16x4xf32>
    %c0_35 = arith.constant 0 : index
    %c0_36 = arith.constant 0 : index
    %c0_37 = arith.constant 0 : index
    %c0_38 = arith.constant 0 : index
    %85 = vector.load %arg4[%c0_35, %c0_36, %c0_37, %c0_38] : memref<1x8x16x4xf32, #tpu.memory_space<vmem>>, vector<1x8x16x4xf32>
    %86 = vector.shape_cast %85 : vector<1x8x16x4xf32> to vector<8x16x4xf32>
    %87 = vector.shape_cast %84 : vector<8x16x4xf32> to vector<1x8x16x4xf32>
    tpu.vector_store %arg4[%c0_35, %c0_36, %c0_37, %c0_38], %87 {strides = array<i32>} : memref<1x8x16x4xf32, #tpu.memory_space<vmem>>, vector<1x8x16x4xf32>,
    return
  }
  func.func @transform_0(%arg0: i32, %arg1: i32) -> (i32, i32, i32, i32) {
    %c0_i32 = arith.constant 0 : i32
    %c0_i32_0 = arith.constant 0 : i32
    %c0_i32_1 = arith.constant 0 : i32
    %c0_i32_2 = arith.constant 0 : i32
    return %arg0, %c0_i32, %c0_i32_0, %c0_i32_1 : i32, i32, i32, i32
  }
  func.func @transform_1(%arg0: i32, %arg1: i32) -> (i32, i32) {
    %c0_i32 = arith.constant 0 : i32
    %c0_i32_0 = arith.constant 0 : i32
    %c0_i32_1 = arith.constant 0 : i32
    return %c0_i32, %c0_i32_0 : i32, i32
  }
  func.func @transform_2(%arg0: i32, %arg1: i32) -> (i32, i32, i32, i32) {
    %c0_i32 = arith.constant 0 : i32
    %c0_i32_0 = arith.constant 0 : i32
    %c0_i32_1 = arith.constant 0 : i32
    return %arg0, %arg1, %c0_i32, %c0_i32_0 : i32, i32, i32, i32
  }
}

</mosaic_0001>

<bundles_post_ra>
// kernel: tpu_custom_call.1
= control target key start
LH: loop header
LB: loop body
LE: loop exit
PB: predicated region body
PF: predicated region fallthrough
CT: control target
= control target key end

     0   :  { %s1104_s9 = smov 0   ;;  %s1106_s10 = smov 0   ;;  %s1570_s0 = inlined_call_operand.vmem [shape: f32[2,16,16,4], index: 0, kind: input, shape index: {}]   ;;  %s1571_s1 = inlined_call_operand.vmem [shape: f32[9,4], index: 1, kind: input, shape index: {}]   ;;  %s1572_s2 = inlined_call_operand.vmem [shape: f32[2,16,16,4], index: 2, kind: output, shape index: {}]  }
   0x1   :  { %s1108_s11 = smov 0   ;;  %s1110_s12 = smov 0  }
   0x2   :  { %s1112_s13 = smov 0  }
   0x3 LB: > { %s21_s14 = sadd.s32 1, %s1078_s11  ;;  %s24_s15 = sadd.s32 1, %s1082_s12  ;;  %s1086_s13 = sphi %s1112_s13, %s12_s13   ;;  %s1082_s12 = sphi %s1110_s12, %s1576_s12   ;;  %s1078_s11 = sphi %s1108_s11, %s1575_s11   ;;  %s1074_s10 = sphi %s1106_s10, %s1574_s10   ;;  %s1070_s9 = sphi %s1104_s9, %s1573_s9  }
   0x4   : > { %p22_p0 = scmp.ge.s32.totalorder %s21_s14, 2  ;;  %p885_p1 = scmp.ge.s32.totalorder %s1086_s13, 1 }
   0x5   : > { %p126_p2 = scmp.lt.s32.totalorder %s1086_s13, 5 }
   0x6   : > { %s1578_s14 = smov (%p22_p0, %s21_s14), 0  ;;  %s1580_s15 = smov (!%p22_p0, %s24_s15), %s1082_s12 }
   0x7   : > { %p127_p3 = pnand %p885_p1, %p126_p2  ;;  %p26_p4 = scmp.ge.s32.totalorder %s1580_s15, 2 }
   0x8   : > { %p153_p5 = scmp.lt.s32.totalorder (!%p127_p3), %s1074_s10, 1  ;;  %s888_s16 = sshll.u32 (!%p127_p3), %s1070_s9, 3 }
   0x9   : > { %s1582_s15 = smov (%p26_p4, %s1580_s15), 0  ;;  %130 = sbr.rel (%p127_p3) target bundleno = 147 (0x93), region = 28 }
   0xa   : > { %p161_p6 = scmp.lt.s32.totalorder (!%p127_p3), %s888_s16, 15  ;;  %p892_p7 = scmp.ne.s32.totalorder (!%p127_p3), %s1070_s9, 0 }
  0x10   : > { %s1584_s10 = smov (!%p153_p5, %s1074_s10), 1  ;;  %s1586_s16 = smov (!%p161_p6, %s888_s16), 15 }
  0x11   : > { %s1006_s17 = sshll.u32 %s1584_s10, 8  ;;  %s890_s18 = sshll.u32 %s1584_s10, 5  ;;  %vm173_vm0 = vcmask (!%p892_p7), 31744   ;;  %vm176_vm1 = vcmask (!%p892_p7), 25600   ;;  %v1088_v3 = vmov (!%p892_p7), 0.0  }
  0x12   : > { %s1140_s21 = scalar_lea.vmem %s1570_s0, %s1006_s17  ;;  %s889_s22 = sshll.u32 %s1586_s16, 1  ;;  %178 = vst.msk [vmem:[#allocation2 + $0x18] sm:$0xff] (!%p892_p7), %vm173_vm0, %v1088_v3  ;;  %174 = vst.msk [vmem:[#allocation2] sm:$0xff] (!%p892_p7), %vm173_vm0, %v1088_v3 }
  0x13   : > { %s165_s23 = sadd.s32 %s890_s18, %s889_s22  ;;  %172 = sbr.rel (%p892_p7) target bundleno = 62 (0x3e), region = 32  ;;  %v229_v0 = vld [vmem:[%s1140_s21] sm:$0xff] (!%p892_p7)  ;;  %v230_v1 = vld [vmem:[%s1140_s21 + $0x8] sm:$0xff] (!%p892_p7)  ;;  %v231_v2 = vld [vmem:[%s1140_s21 + $0x10] sm:$0xff] (!%p892_p7)  ;;  %175 = vst.msk [vmem:[#allocation2 + $0x8] sm:$0xff] (!%p892_p7), %vm173_vm0, %v1088_v3 }
  0x14   : > { %s891_s24 = sshll.u32 %s165_s23, 3  ;;  %179 = vst.msk [vmem:[#allocation2 + $0x20] sm:$0xff] (!%p892_p7), %vm173_vm0, %v1088_v3  ;;  %181 = vst.msk [vmem:[#allocation2 + $0x30] sm:$0xff] (!%p892_p7), %vm173_vm0, %v1088_v3  ;;  %v232_v4 = vld [vmem:[%s1140_s21 + $0x18] sm:$0xff] (!%p892_p7)  ;;  %v233_v5 = vld [vmem:[%s1140_s21 + $0x20] sm:$0xff] (!%p892_p7) }
  0x15   : > { %s1145_s27 = scalar_lea.vmem %s1572_s2, %s891_s24  ;;  %182 = vst.msk [vmem:[#allocation2 + $0x38] sm:$0xff] (!%p892_p7), %vm173_vm0, %v1088_v3  ;;  %184 = vst.msk [vmem:[#allocation2 + $0x48] sm:$0xff] (!%p892_p7), %vm173_vm0, %v1088_v3  ;;  %v234_v6 = vld [vmem:[%s1140_s21 + $0x28] sm:$0xff] (!%p892_p7)  ;;  %v235_v7 = vld [vmem:[%s1140_s21 + $0x30] sm:$0xff] (!%p892_p7) }
  0x16   : > { %185 = vst.msk [vmem:[#allocation2 + $0x50] sm:$0xff] (!%p892_p7), %vm173_vm0, %v1088_v3  ;;  %187 = vst.msk [vmem:[#allocation2 + $0x60] sm:$0xff] (!%p892_p7), %vm173_vm0, %v1088_v3  ;;  %v236_v8 = vld [vmem:[%s1140_s21 + $0x38] sm:$0xff] (!%p892_p7)  ;;  %v237_v9 = vld [vmem:[%s1140_s21 + $0x40] sm:$0xff] (!%p892_p7) }
  0x17   : > { %188 = vst.msk [vmem:[#allocation2 + $0x68] sm:$0xff] (!%p892_p7), %vm173_vm0, %v1088_v3  ;;  %190 = vst.msk [vmem:[#allocation2 + $0x78] sm:$0xff] (!%p892_p7), %vm173_vm0, %v1088_v3  ;;  %v238_v10 = vld [vmem:[%s1140_s21 + $0x48] sm:$0xff] (!%p892_p7)  ;;  %v239_v11 = vld [vmem:[%s1140_s21 + $0x50] sm:$0xff] (!%p892_p7) }
  0x18   : > { %191 = vst.msk [vmem:[#allocation2 + $0x80] sm:$0xff] (!%p892_p7), %vm173_vm0, %v1088_v3  ;;  %193 = vst.msk [vmem:[#allocation2 + $0x90] sm:$0xff] (!%p892_p7), %vm173_vm0, %v1088_v3  ;;  %v240_v12 = vld [vmem:[%s1140_s21 + $0x58] sm:$0xff] (!%p892_p7)  ;;  %v241_v13 = vld [vmem:[%s1140_s21 + $0x60] sm:$0xff] (!%p892_p7) }
  0x19   : > { %194 = vst.msk [vmem:[#allocation2 + $0x98] sm:$0xff] (!%p892_p7), %vm173_vm0, %v1088_v3  ;;  %196 = vst.msk [vmem:[#allocation2 + $0xa8] sm:$0xff] (!%p892_p7), %vm173_vm0, %v1088_v3  ;;  %v242_v14 = vld [vmem:[%s1140_s21 + $0x68] sm:$0xff] (!%p892_p7)  ;;  %v243_v15 = vld [vmem:[%s1140_s21 + $0x70] sm:$0xff] (!%p892_p7) }
  0x1a   : > { %197 = vst.msk [vmem:[#allocation2 + $0xb0] sm:$0xff] %vm173_vm0, %v1088_v3  ;;  %199 = vst.msk [vmem:[#allocation2 + $0xc0] sm:$0xff] %vm173_vm0, %v1088_v3  ;;  %v244_v16 = vld [vmem:[%s1140_s21 + $0x78] sm:$0xff]  ;;  %v245_v17 = vld [vmem:[%s1140_s21 + $0x80] sm:$0xff] }
  0x1b   : > { %200 = vst.msk [vmem:[#allocation2 + $0xc8] sm:$0xff] %vm173_vm0, %v1088_v3  ;;  %202 = vst.msk [vmem:[#allocation2 + $0xd8] sm:$0xff] %vm173_vm0, %v1088_v3  ;;  %v246_v18 = vld [vmem:[%s1140_s21 + $0x88] sm:$0xff]  ;;  %v247_v19 = vld [vmem:[%s1140_s21 + $0x90] sm:$0xff] }
  0x1c   : > { %203 = vst.msk [vmem:[#allocation2 + $0xe0] sm:$0xff] %vm173_vm0, %v1088_v3  ;;  %205 = vst.msk [vmem:[#allocation2 + $0xf0] sm:$0xff] %vm173_vm0, %v1088_v3  ;;  %v248_v20 = vld [vmem:[%s1140_s21 + $0x98] sm:$0xff]  ;;  %v249_v21 = vld [vmem:[%s1140_s21 + $0xa0] sm:$0xff] }
  0x1d   : > { %206 = vst.msk [vmem:[#allocation2 + $0xf8] sm:$0xff] %vm173_vm0, %v1088_v3  ;;  %208 = vst.msk [vmem:[#allocation2 + $0x108] sm:$0xff] %vm173_vm0, %v1088_v3  ;;  %v250_v22 = vld [vmem:[%s1140_s21 + $0xa8] sm:$0xff]  ;;  %v251_v23 = vld [vmem:[%s1140_s21 + $0xb0] sm:$0xff] }
  0x1e   : > { %209 = vst.msk [vmem:[#allocation2 + $0x110] sm:$0xff] %vm173_vm0, %v1088_v3  ;;  %211 = vst.msk [vmem:[#allocation2 + $0x120] sm:$0xff] %vm173_vm0, %v1088_v3  ;;  %v252_v24 = vld [vmem:[%s1140_s21 + $0xb8] sm:$0xff]  ;;  %v253_v25 = vld [vmem:[%s1140_s21 + $0xc0] sm:$0xff] }
  0x1f   : > { %212 = vst.msk [vmem:[#allocation2 + $0x128] sm:$0xff] %vm173_vm0, %v1088_v3  ;;  %214 = vst.msk [vmem:[#allocation2 + $0x138] sm:$0xff] %vm173_vm0, %v1088_v3  ;;  %v254_v26 = vld [vmem:[%s1140_s21 + $0xc8] sm:$0xff]  ;;  %v255_v27 = vld [vmem:[%s1140_s21 + $0xd0] sm:$0xff] }
  0x20   : > { %215 = vst.msk [vmem:[#allocation2 + $0x140] sm:$0xff] %vm173_vm0, %v1088_v3  ;;  %217 = vst.msk [vmem:[#allocation2 + $0x150] sm:$0xff] %vm173_vm0, %v1088_v3  ;;  %v256_v28 = vld [vmem:[%s1140_s21 + $0xd8] sm:$0xff]  ;;  %v257_v29 = vld [vmem:[%s1140_s21 + $0xe0] sm:$0xff] }
  0x21   : > { %218 = vst.msk [vmem:[#allocation2 + $0x158] sm:$0xff] %vm173_vm0, %v1088_v3  ;;  %220 = vst.msk [vmem:[#allocation2 + $0x168] sm:$0xff] %vm173_vm0, %v1088_v3  ;;  %v258_v30 = vld [vmem:[%s1140_s21 + $0xe8] sm:$0xff]  ;;  %v259_v31 = vld [vmem:[%s1140_s21 + $0xf0] sm:$0xff] }
  0x22   : > { %221 = vst.msk [vmem:[#allocation2 + $0x170] sm:$0xff] %vm173_vm0, %v1088_v3  ;;  %223 = vst.msk [vmem:[#allocation2 + $0x180] sm:$0xff] %vm173_vm0, %v1088_v3  ;;  %v260_v32 = vld [vmem:[%s1140_s21 + $0xf8] sm:$0xff] }
  0x23   : > { %224 = vst.msk [vmem:[#allocation2 + $0x188] sm:$0xff] %vm173_vm0, %v1088_v3  ;;  %226 = vst.msk [vmem:[#allocation2 + $0x198] sm:$0xff] %vm173_vm0, %v1088_v3 }
  0x24   : > { %227 = vst.msk [vmem:[#allocation2 + $0x1a0] sm:$0xff] %vm173_vm0, %v1088_v3  ;;  %262 = vst.msk [vmem:[#allocation2 + $0x19] sm:$0xff] %vm173_vm0, %v229_v0 }
  0x25   : > { %180 = vst.msk [vmem:[#allocation2 + $0x28] sm:$0x3] %vm176_vm1, %v1088_v3  ;;  %177 = vst.msk [vmem:[#allocation2 + $0x10] sm:$0x3] %vm176_vm1, %v1088_v3 }
  0x26   : > { %183 = vst.msk [vmem:[#allocation2 + $0x40] sm:$0x3] %vm176_vm1, %v1088_v3  ;;  %186 = vst.msk [vmem:[#allocation2 + $0x58] sm:$0x3] %vm176_vm1, %v1088_v3 }
  0x27   : > { %189 = vst.msk [vmem:[#allocation2 + $0x70] sm:$0x3] %vm176_vm1, %v1088_v3  ;;  %192 = vst.msk [vmem:[#allocation2 + $0x88] sm:$0x3] %vm176_vm1, %v1088_v3 }
  0x28   : > { %195 = vst.msk [vmem:[#allocation2 + $0xa0] sm:$0x3] %vm176_vm1, %v1088_v3  ;;  %198 = vst.msk [vmem:[#allocation2 + $0xb8] sm:$0x3] %vm176_vm1, %v1088_v3 }
  0x29   : > { %201 = vst.msk [vmem:[#allocation2 + $0xd0] sm:$0x3] %vm176_vm1, %v1088_v3  ;;  %204 = vst.msk [vmem:[#allocation2 + $0xe8] sm:$0x3] %vm176_vm1, %v1088_v3 }
  0x2a   : > { %207 = vst.msk [vmem:[#allocation2 + $0x100] sm:$0x3] %vm176_vm1, %v1088_v3  ;;  %210 = vst.msk [vmem:[#allocation2 + $0x118] sm:$0x3] %vm176_vm1, %v1088_v3 }
  0x2b   : > { %213 = vst.msk [vmem:[#allocation2 + $0x130] sm:$0x3] %vm176_vm1, %v1088_v3  ;;  %216 = vst.msk [vmem:[#allocation2 + $0x148] sm:$0x3] %vm176_vm1, %v1088_v3 }
  0x2c   : > { %219 = vst.msk [vmem:[#allocation2 + $0x160] sm:$0x3] %vm176_vm1, %v1088_v3  ;;  %222 = vst.msk [vmem:[#allocation2 + $0x178] sm:$0x3] %vm176_vm1, %v1088_v3 }
  0x2d   : > { %225 = vst.msk [vmem:[#allocation2 + $0x190] sm:$0x3] %vm176_vm1, %v1088_v3  ;;  %228 = vst.msk [vmem:[#allocation2 + $0x1a8] sm:$0x3] %vm176_vm1, %v1088_v3 }
  0x2e   : > { %263 = vst.msk [vmem:[#allocation2 + $0x21] sm:$0xff] %vm173_vm0, %v230_v1  ;;  %264 = vst.msk [vmem:[#allocation2 + $0x31] sm:$0xff] %vm173_vm0, %v231_v2 }
  0x2f   : > { %265 = vst.msk [vmem:[#allocation2 + $0x39] sm:$0xff] %vm173_vm0, %v232_v4  ;;  %266 = vst.msk [vmem:[#allocation2 + $0x49] sm:$0xff] %vm173_vm0, %v233_v5 }
  0x30   : > { %267 = vst.msk [vmem:[#allocation2 + $0x51] sm:$0xff] %vm173_vm0, %v234_v6  ;;  %268 = vst.msk [vmem:[#allocation2 + $0x61] sm:$0xff] %vm173_vm0, %v235_v7 }
  0x31   : > { %269 = vst.msk [vmem:[#allocation2 + $0x69] sm:$0xff] %vm173_vm0, %v236_v8  ;;  %270 = vst.msk [vmem:[#allocation2 + $0x79] sm:$0xff] %vm173_vm0, %v237_v9 }
  0x32   : > { %271 = vst.msk [vmem:[#allocation2 + $0x81] sm:$0xff] %vm173_vm0, %v238_v10  ;;  %272 = vst.msk [vmem:[#allocation2 + $0x91] sm:$0xff] %vm173_vm0, %v239_v11 }
  0x33   : > { %273 = vst.msk [vmem:[#allocation2 + $0x99] sm:$0xff] %vm173_vm0, %v240_v12  ;;  %274 = vst.msk [vmem:[#allocation2 + $0xa9] sm:$0xff] %vm173_vm0, %v241_v13 }
  0x34   : > { %275 = vst.msk [vmem:[#allocation2 + $0xb1] sm:$0xff] %vm173_vm0, %v242_v14  ;;  %276 = vst.msk [vmem:[#allocation2 + $0xc1] sm:$0xff] %vm173_vm0, %v243_v15 }
  0x35   : > { %277 = vst.msk [vmem:[#allocation2 + $0xc9] sm:$0xff] %vm173_vm0, %v244_v16  ;;  %278 = vst.msk [vmem:[#allocation2 + $0xd9] sm:$0xff] %vm173_vm0, %v245_v17 }
  0x36   : > { %279 = vst.msk [vmem:[#allocation2 + $0xe1] sm:$0xff] %vm173_vm0, %v246_v18  ;;  %280 = vst.msk [vmem:[#allocation2 + $0xf1] sm:$0xff] %vm173_vm0, %v247_v19 }
  0x37   : > { %281 = vst.msk [vmem:[#allocation2 + $0xf9] sm:$0xff] %vm173_vm0, %v248_v20  ;;  %282 = vst.msk [vmem:[#allocation2 + $0x109] sm:$0xff] %vm173_vm0, %v249_v21 }
  0x38   : > { %283 = vst.msk [vmem:[#allocation2 + $0x111] sm:$0xff] %vm173_vm0, %v250_v22  ;;  %284 = vst.msk [vmem:[#allocation2 + $0x121] sm:$0xff] %vm173_vm0, %v251_v23 }
  0x39   : > { %285 = vst.msk [vmem:[#allocation2 + $0x129] sm:$0xff] %vm173_vm0, %v252_v24  ;;  %286 = vst.msk [vmem:[#allocation2 + $0x139] sm:$0xff] %vm173_vm0, %v253_v25 }
  0x3a   : > { %287 = vst.msk [vmem:[#allocation2 + $0x141] sm:$0xff] %vm173_vm0, %v254_v26  ;;  %288 = vst.msk [vmem:[#allocation2 + $0x151] sm:$0xff] %vm173_vm0, %v255_v27 }
  0x3b   : > { %289 = vst.msk [vmem:[#allocation2 + $0x159] sm:$0xff] %vm173_vm0, %v256_v28  ;;  %290 = vst.msk [vmem:[#allocation2 + $0x169] sm:$0xff] %vm173_vm0, %v257_v29 }
  0x3c   : > { %291 = vst.msk [vmem:[#allocation2 + $0x171] sm:$0xff] %vm173_vm0, %v258_v30  ;;  %292 = vst.msk [vmem:[#allocation2 + $0x181] sm:$0xff] %vm173_vm0, %v259_v31 }
  0x3d   : > { %293 = vst.msk [vmem:[#allocation2 + $0x189] sm:$0xff] %vm173_vm0, %v260_v32 }
  0x3e PF: > { %s894_s28 = smul.u32 192, %s1070_s9  ;;  %v1270_v33 = vld [vmem:[%s1571_s1] ss:$0 sm:$0xff]  ;;  %v1275_v34 = vld [vmem:[%s1571_s1 + $0x1] ss:$0 sm:$0xff]  ;;  %vm764_vm2 = vcmask 31744  }
  0x3f   : > { %v1280_v35 = vld [vmem:[%s1571_s1 + $0x2] ss:$0 sm:$0xff]  ;;  %v1285_v36 = vld [vmem:[%s1571_s1 + $0x3] ss:$0 sm:$0xff]  ;;  %v1290_v37 = vld [vmem:[%s1571_s1 + $0x4] ss:$0 sm:$0xff] }
  0x40   : > { %v1295_v38 = vld [vmem:[%s1571_s1 + $0x5] ss:$0 sm:$0xff]  ;;  %s1297_s18 = scalar_lea.vmem [#allocation2], %s894_s28  ;;  %v1311_v48 = vld [vmem:[%s1571_s1 + $0x6] ss:$0 sm:$0xff] }
  0x41   : > { %v1318_v52 = vld [vmem:[%s1571_s1 + $0x7] ss:$0 sm:$0xff]  ;;  %v1323_v53 = vld [vmem:[%s1571_s1 + $0x8] ss:$0 sm:$0xff] }
  0x44   : > { %v297_v39 = vld [vmem:[%s1297_s18] sm:$0xff]  ;;  %v900_v45 = vld [vmem:[%s1297_s18 + $0x18] sm:$0xff]  ;;  %v298_v54 = vld [vmem:[%s1297_s18 + $0x8] sm:$0xff] }
  0x45   : > { %v334_v40 = vld [vmem:[%s1297_s18 + $0x1] sm:$0xff]  ;;  %v318_v42 = vmul.f32 %v1270_v33, %v297_v39  ;;  %v917_v46 = vld [vmem:[%s1297_s18 + $0x19] sm:$0xff]  ;;  %v320_v49 = vmul.f32 %v900_v45, %v1270_v33  ;;  %v464_v51 = vmul.f32 %v1285_v36, %v900_v45  ;;  %v953_v58 = vld [vmem:[%s1297_s18 + $0x30] sm:$0xff]  ;;  %v319_v59 = vmul.f32 %v1270_v33, %v298_v54 }
  0x46   : > { %v387_v41 = vld [vmem:[%s1297_s18 + $0x2] sm:$0xff]  ;;  %v355_v43 = vmul.f32 %v1275_v34, %v334_v40  ;;  %v934_v47 = vld [vmem:[%s1297_s18 + $0x1a] sm:$0xff]  ;;  %v357_v55 = vmul.f32 %v917_v46, %v1275_v34  ;;  %v517_v56 = vmul.f32 %v1290_v37, %v917_v46  ;;  %v388_v61 = vld [vmem:[%s1297_s18 + $0xa] sm:$0xff]  ;;  %v626_v0 = vmul.f32 %v1311_v48, %v953_v58 }
  0x47   : > { %v408_v44 = vmul.f32 %v1280_v35, %v387_v41  ;;  %v570_v57 = vmul.f32 %v1295_v38, %v934_v47  ;;  %v335_v60 = vld [vmem:[%s1297_s18 + $0x9] sm:$0xff]  ;;  %v410_v62 = vmul.f32 %v934_v47, %v1280_v35  ;;  %v970_v1 = vld [vmem:[%s1297_s18 + $0x31] sm:$0xff]  ;;  %v409_v4 = vmul.f32 %v1280_v35, %v388_v61  ;;  %v901_v7 = vld [vmem:[%s1297_s18 + $0x20] sm:$0xff] }
  0x48   : > { %v371_v50 = vadd.f32 %v355_v43, %v318_v42  ;;  %v987_v2 = vld [vmem:[%s1297_s18 + $0x32] sm:$0xff]  ;;  %v356_v3 = vmul.f32 %v1275_v34, %v335_v60  ;;  %v679_v5 = vmul.f32 %v1318_v52, %v970_v1  ;;  %v918_v8 = vld [vmem:[%s1297_s18 + $0x21] sm:$0xff]  ;;  %v373_v9 = vadd.f32 %v357_v55, %v320_v49  ;;  %v972_v42 = vld [vmem:[%s1297_s18 + $0x49] sm:$0xff] }
  0x49   : > { %v732_v6 = vmul.f32 %v1323_v53, %v987_v2  ;;  %v466_v10 = vmul.f32 %v953_v58, %v1285_v36  ;;  %v465_v13 = vmul.f32 %v1285_v36, %v901_v7  ;;  %v518_v14 = vmul.f32 %v1290_v37, %v918_v8  ;;  %v935_v15 = vld [vmem:[%s1297_s18 + $0x22] sm:$0xff]  ;;  %v954_v16 = vld [vmem:[%s1297_s18 + $0x38] sm:$0xff]  ;;  %v989_v45 = vld [vmem:[%s1297_s18 + $0x4a] sm:$0xff] }
  0x4a   : > { %v424_v63 = vadd.f32 %v408_v44, %v371_v50  ;;  %v372_v12 = vadd.f32 %v356_v3, %v319_v59  ;;  %v571_v17 = vmul.f32 %v1295_v38, %v935_v15  ;;  %v627_v18 = vmul.f32 %v1311_v48, %v954_v16  ;;  %v971_v19 = vld [vmem:[%s1297_s18 + $0x39] sm:$0xff]  ;;  %v1356_v28 = vld [vmem:[%s1297_s18 + $0x48] sm:$0xff] }
  0x4b   : > { %v426_v20 = vadd.f32 %v410_v62, %v373_v9  ;;  %v519_v21 = vmul.f32 %v970_v1, %v1290_v37  ;;  %v680_v24 = vmul.f32 %v1318_v52, %v971_v19  ;;  %v572_v25 = vmul.f32 %v987_v2, %v1295_v38  ;;  %v988_v26 = vld [vmem:[%s1297_s18 + $0x3a] sm:$0xff] }
  0x4c   : > { %v480_v11 = vadd.f32 %v464_v51, %v424_v63  ;;  %v425_v23 = vadd.f32 %v409_v4, %v372_v12  ;;  %v321_v29 = vmul.f32 %v901_v7, %v1270_v33  ;;  %v358_v30 = vmul.f32 %v918_v8, %v1275_v34  ;;  %v956_v4 = vld [vmem:[%s1297_s18 + $0x50] sm:$0xff] }
  0x4d   : > { %v482_v27 = vadd.f32 %v466_v10, %v426_v20  ;;  %v411_v31 = vmul.f32 %v935_v15, %v1280_v35  ;;  %v733_v40 = vmul.f32 %v1323_v53, %v988_v26  ;;  %v628_v41 = vmul.f32 %v1311_v48, %v1356_v28  ;;  %v973_v7 = vld [vmem:[%s1297_s18 + $0x51] sm:$0xff] }
  0x4e   : > { %v533_v22 = vadd.f32 %v517_v56, %v480_v11  ;;  %v481_v39 = vadd.f32 %v465_v13, %v425_v23  ;;  %v681_v44 = vmul.f32 %v1318_v52, %v972_v42  ;;  %v374_v46 = vadd.f32 %v358_v30, %v321_v29 }
  0x4f   : > { %v535_v43 = vadd.f32 %v519_v21, %v482_v27  ;;  %v467_v47 = vmul.f32 %v954_v16, %v1285_v36  ;;  %v734_v51 = vmul.f32 %v1323_v53, %v989_v45  ;;  %v520_v54 = vmul.f32 %v971_v19, %v1290_v37  ;;  %v957_v27 = vld [vmem:[%s1297_s18 + $0x60] sm:$0xff] }
  0x50   : > { %v586_v32 = vadd.f32 %v570_v57, %v533_v22  ;;  %v534_v50 = vadd.f32 %v518_v14, %v481_v39  ;;  %v427_v56 = vadd.f32 %v411_v31, %v374_v46  ;;  %v322_v57 = vmul.f32 %v953_v58, %v1270_v33  ;;  %v991_v46 = vld [vmem:[%s1297_s18 + $0x62] sm:$0xff] }
  0x51   : > { %v588_v55 = vadd.f32 %v572_v25, %v535_v43  ;;  %v359_v59 = vmul.f32 %v970_v1, %v1275_v34  ;;  %v573_v62 = vmul.f32 %v988_v26, %v1295_v38  ;;  %v412_v63 = vmul.f32 %v987_v2, %v1280_v35  ;;  %v990_v25 = vld [vmem:[%s1297_s18 + $0x52] sm:$0xff] }
  0x52   : > { %v642_v49 = vadd.f32 %v626_v0, %v586_v32  ;;  %v587_v61 = vadd.f32 %v571_v17, %v534_v50  ;;  %v483_v0 = vadd.f32 %v467_v47, %v427_v56  ;;  %v468_v9 = vmul.f32 %v1356_v28, %v1285_v36  ;;  %v974_v32 = vld [vmem:[%s1297_s18 + $0x61] sm:$0xff] }
  0x53   : > { %v644_v3 = vadd.f32 %v628_v41, %v588_v55  ;;  %v375_v8 = vadd.f32 %v359_v59, %v322_v57  ;;  %v629_v58 = vmul.f32 %v1311_v48, %v956_v4  ;;  %v682_v1 = vmul.f32 %v1318_v52, %v973_v7  ;;  %v958_v57 = vld [vmem:[%s1297_s18 + $0x68] sm:$0xff] }
  0x54   : > { %v695_v60 = vadd.f32 %v679_v5, %v642_v49  ;;  %v643_v11 = vadd.f32 %v627_v18, %v587_v61  ;;  %v536_v12 = vadd.f32 %v520_v54, %v483_v0  ;;  %v521_v2 = vmul.f32 %v972_v42, %v1290_v37 }
  0x55   : > { %v697_v5 = vadd.f32 %v681_v44, %v644_v3  ;;  %v428_v13 = vadd.f32 %v412_v63, %v375_v8  ;;  %v574_v15 = vmul.f32 %v989_v45, %v1295_v38  ;;  %v360_v17 = vmul.f32 %v971_v19, %v1275_v34  ;;  %v975_v63 = vld [vmem:[%s1297_s18 + $0x69] sm:$0xff] }
  0x56   : > { %v748_v10 = vadd.f32 %v732_v6, %v695_v60  ;;  %v696_v14 = vadd.f32 %v680_v24, %v643_v11  ;;  %v323_v6 = vmul.f32 %v954_v16, %v1270_v33  ;;  %v589_v20 = vadd.f32 %v573_v62, %v536_v12  ;;  %v992_v3 = vld [vmem:[%s1297_s18 + $0x6a] sm:$0xff]  ;;  %v959_v12 = vld [vmem:[%s1297_s18 + $0x78] sm:$0xff] }
  0x57   : > { %v750_v18 = vadd.f32 %v734_v51, %v697_v5  ;;  %v484_v21 = vadd.f32 %v468_v9, %v428_v13  ;;  %v413_v22 = vmul.f32 %v988_v26, %v1280_v35  ;;  %v469_v24 = vmul.f32 %v956_v4, %v1285_v36 }
  0x58   : > { %765 = vst.msk [vmem:[%s1145_s27] sm:$0xff] %vm764_vm2, %v748_v10  ;;  %v749_v23 = vadd.f32 %v733_v40, %v696_v14  ;;  %v376_v29 = vadd.f32 %v360_v17, %v323_v6  ;;  %v645_v30 = vadd.f32 %v629_v58, %v589_v20  ;;  %v735_v16 = vmul.f32 %v1323_v53, %v990_v25  ;;  %v993_v20 = vld [vmem:[%s1297_s18 + $0x7a] sm:$0xff] }
  0x59   : > { %767 = vst.msk [vmem:[%s1145_s27 + $0x10] sm:$0xff] %vm764_vm2, %v750_v18  ;;  %v537_v31 = vadd.f32 %v521_v2, %v484_v21  ;;  %v630_v19 = vmul.f32 %v1311_v48, %v957_v27  ;;  %v683_v26 = vmul.f32 %v1318_v52, %v974_v32  ;;  %v522_v40 = vmul.f32 %v973_v7, %v1290_v37  ;;  %v976_v18 = vld [vmem:[%s1297_s18 + $0x79] sm:$0xff] }
  0x5a   : > { %766 = vst.msk [vmem:[%s1145_s27 + $0x8] sm:$0xff] %vm764_vm2, %v749_v23  ;;  %v429_v39 = vadd.f32 %v413_v22, %v376_v29  ;;  %v324_v41 = vmul.f32 %v1356_v28, %v1270_v33  ;;  %v698_v43 = vadd.f32 %v682_v1, %v645_v30  ;;  %v361_v47 = vmul.f32 %v972_v42, %v1275_v34 }
  0x5b   : > { %v590_v44 = vadd.f32 %v574_v15, %v537_v31  ;;  %v414_v49 = vmul.f32 %v989_v45, %v1280_v35  ;;  %v736_v50 = vmul.f32 %v1323_v53, %v991_v46  ;;  %v575_v54 = vmul.f32 %v990_v25, %v1295_v38  ;;  %v960_v31 = vld [vmem:[%s1297_s18 + $0x80] sm:$0xff] }
  0x5c   : > { %v485_v51 = vadd.f32 %v469_v24, %v429_v39  ;;  %v751_v55 = vadd.f32 %v735_v16, %v698_v43  ;;  %v377_v59 = vadd.f32 %v361_v47, %v324_v41  ;;  %v470_v28 = vmul.f32 %v957_v27, %v1285_v36 }
  0x5d   : > { %v646_v56 = vadd.f32 %v630_v19, %v590_v44  ;;  %v631_v61 = vmul.f32 %v1311_v48, %v958_v57  ;;  %v523_v42 = vmul.f32 %v974_v32, %v1290_v37  ;;  %v325_v45 = vmul.f32 %v956_v4, %v1270_v33 }
  0x5e   : > { %v538_v60 = vadd.f32 %v522_v40, %v485_v51  ;;  %768 = vst.msk [vmem:[%s1145_s27 + $0x18] sm:$0xff] %vm764_vm2, %v751_v55  ;;  %v430_v0 = vadd.f32 %v414_v49, %v377_v59  ;;  %v362_v8 = vmul.f32 %v973_v7, %v1275_v34  ;;  %v415_v9 = vmul.f32 %v990_v25, %v1280_v35  ;;  %v994_v59 = vld [vmem:[%s1297_s18 + $0x82] sm:$0xff] }
  0x5f   : > { %v699_v62 = vadd.f32 %v683_v26, %v646_v56  ;;  %v684_v11 = vmul.f32 %v1318_v52, %v975_v63  ;;  %v737_v58 = vmul.f32 %v1323_v53, %v992_v3  ;;  %v576_v4 = vmul.f32 %v991_v46, %v1295_v38 }
  0x60   : > { %v591_v10 = vadd.f32 %v575_v54, %v538_v60  ;;  %v486_v5 = vadd.f32 %v470_v28, %v430_v0  ;;  %v378_v13 = vadd.f32 %v362_v8, %v325_v45  ;;  %v471_v2 = vmul.f32 %v958_v57, %v1285_v36  ;;  %v961_v60 = vld [vmem:[%s1297_s18 + $0x90] sm:$0xff] }
  0x61   : > { %v752_v1 = vadd.f32 %v736_v50, %v699_v62  ;;  %v632_v7 = vmul.f32 %v1311_v48, %v959_v12  ;;  %v524_v15 = vmul.f32 %v975_v63, %v1290_v37  ;;  %v326_v6 = vmul.f32 %v957_v27, %v1270_v33 }
  0x62   : > { %v647_v14 = vadd.f32 %v631_v61, %v591_v10  ;;  %v539_v17 = vadd.f32 %v523_v42, %v486_v5  ;;  %v431_v21 = vadd.f32 %v415_v9, %v378_v13  ;;  %v363_v22 = vmul.f32 %v974_v32, %v1275_v34  ;;  %v978_v9 = vld [vmem:[%s1297_s18 + $0x91] sm:$0xff] }
  0x63   : > { %769 = vst.msk [vmem:[%s1145_s27 + $0x20] sm:$0xff] %vm764_vm2, %v752_v1  ;;  %v416_v23 = vmul.f32 %v991_v46, %v1280_v35  ;;  %v685_v29 = vmul.f32 %v1318_v52, %v976_v18  ;;  %v738_v24 = vmul.f32 %v1323_v53, %v993_v20  ;;  %v577_v30 = vmul.f32 %v992_v3, %v1295_v38  ;;  %v977_v46 = vld [vmem:[%s1297_s18 + $0x81] sm:$0xff]  ;;  %v995_v10 = vld [vmem:[%s1297_s18 + $0x92] sm:$0xff] }
  0x64   : > { %v700_v25 = vadd.f32 %v684_v11, %v647_v14  ;;  %v592_v27 = vadd.f32 %v576_v4, %v539_v17  ;;  %v487_v16 = vadd.f32 %v471_v2, %v431_v21  ;;  %v379_v19 = vadd.f32 %v363_v22, %v326_v6 }
  0x65   : > { %v472_v26 = vmul.f32 %v959_v12, %v1285_v36  ;;  %v633_v32 = vmul.f32 %v1311_v48, %v960_v31  ;;  %v525_v40 = vmul.f32 %v976_v18, %v1290_v37  ;;  %v327_v41 = vmul.f32 %v958_v57, %v1270_v33 }
  0x66   : > { %v753_v39 = vadd.f32 %v737_v58, %v700_v25  ;;  %v648_v43 = vadd.f32 %v632_v7, %v592_v27  ;;  %v540_v44 = vadd.f32 %v524_v15, %v487_v16  ;;  %v432_v47 = vadd.f32 %v416_v23, %v379_v19  ;;  %v962_v7 = vld [vmem:[%s1297_s18 + $0x98] sm:$0xff] }
  0x67   : > { %v364_v49 = vmul.f32 %v975_v63, %v1275_v34  ;;  %v686_v50 = vmul.f32 %v1318_v52, %v977_v46  ;;  %v578_v51 = vmul.f32 %v993_v20, %v1295_v38  ;;  %v417_v54 = vmul.f32 %v992_v3, %v1280_v35  ;;  %v979_v15 = vld [vmem:[%s1297_s18 + $0x99] sm:$0xff] }
  0x68   : > { %770 = vst.msk [vmem:[%s1145_s27 + $0x28] sm:$0xff] %vm764_vm2, %v753_v39  ;;  %v473_v55 = vmul.f32 %v960_v31, %v1285_v36  ;;  %v701_v56 = vadd.f32 %v685_v29, %v648_v43  ;;  %v593_v57 = vadd.f32 %v577_v30, %v540_v44  ;;  %v488_v28 = vadd.f32 %v472_v26, %v432_v47  ;;  %v996_v29 = vld [vmem:[%s1297_s18 + $0x9a] sm:$0xff] }
  0x69   : > { %v380_v61 = vadd.f32 %v364_v49, %v327_v41  ;;  %v739_v42 = vmul.f32 %v1323_v53, %v994_v59  ;;  %v634_v45 = vmul.f32 %v1311_v48, %v961_v60  ;;  %v526_v62 = vmul.f32 %v977_v46, %v1290_v37 }
  0x6a   : > { %v328_v63 = vmul.f32 %v959_v12, %v1270_v33  ;;  %v754_v3 = vadd.f32 %v738_v24, %v701_v56  ;;  %v649_v0 = vadd.f32 %v633_v32, %v593_v57  ;;  %v541_v8 = vadd.f32 %v525_v40, %v488_v28 }
  0x6b   : > { %v433_v11 = vadd.f32 %v417_v54, %v380_v61  ;;  %v687_v58 = vmul.f32 %v1318_v52, %v978_v9  ;;  %v740_v4 = vmul.f32 %v1323_v53, %v995_v10  ;;  %v365_v1 = vmul.f32 %v976_v18, %v1275_v34  ;;  %v980_v54 = vld [vmem:[%s1297_s18 + $0xa9] sm:$0xff] }
  0x6c   : > { %v418_v5 = vmul.f32 %v993_v20, %v1280_v35  ;;  %771 = vst.msk [vmem:[%s1145_s27 + $0x30] sm:$0xff] %vm764_vm2, %v754_v3  ;;  %v702_v12 = vadd.f32 %v686_v50, %v649_v0  ;;  %v594_v13 = vadd.f32 %v578_v51, %v541_v8  ;;  %v579_v14 = vmul.f32 %v994_v59, %v1295_v38 }
  0x6d   : > { %v489_v2 = vadd.f32 %v473_v55, %v433_v11  ;;  %v635_v6 = vmul.f32 %v1311_v48, %v962_v7  ;;  %v688_v17 = vmul.f32 %v1318_v52, %v979_v15  ;;  %v381_v21 = vadd.f32 %v365_v1, %v328_v63  ;;  %v997_v55 = vld [vmem:[%s1297_s18 + $0xaa] sm:$0xff] }
  0x6e   : > { %v474_v18 = vmul.f32 %v961_v60, %v1285_v36  ;;  %v755_v20 = vadd.f32 %v739_v42, %v702_v12  ;;  %v650_v22 = vadd.f32 %v634_v45, %v594_v13  ;;  %v329_v25 = vmul.f32 %v960_v31, %v1270_v33  ;;  %v963_v31 = vld [vmem:[%s1297_s18 + $0xa8] sm:$0xff]  ;;  %v964_v63 = vld [vmem:[%s1297_s18 + $0xb0] sm:$0xff] }
  0x6f   : > { %v542_v23 = vadd.f32 %v526_v62, %v489_v2  ;;  %v434_v24 = vadd.f32 %v418_v5, %v381_v21  ;;  %v527_v30 = vmul.f32 %v978_v9, %v1290_v37  ;;  %v366_v27 = vmul.f32 %v977_v46, %v1275_v34  ;;  %v981_v1 = vld [vmem:[%s1297_s18 + $0xb1] sm:$0xff] }
  0x70   : > { %v419_v16 = vmul.f32 %v994_v59, %v1280_v35  ;;  %772 = vst.msk [vmem:[%s1145_s27 + $0x38] sm:$0xff] %vm764_vm2, %v755_v20  ;;  %v703_v19 = vadd.f32 %v687_v58, %v650_v22  ;;  %v741_v39 = vmul.f32 %v1323_v53, %v996_v29  ;;  %v580_v32 = vmul.f32 %v995_v10, %v1295_v38  ;;  %v965_v20 = vld [vmem:[%s1297_s18 + $0xc0] sm:$0xff] }
  0x71   : > { %v595_v26 = vadd.f32 %v579_v14, %v542_v23  ;;  %v490_v40 = vadd.f32 %v474_v18, %v434_v24  ;;  %v636_v41 = vmul.f32 %v1311_v48, %v963_v31  ;;  %v382_v43 = vadd.f32 %v366_v27, %v329_v25 }
  0x72   : > { %v475_v44 = vmul.f32 %v962_v7, %v1285_v36  ;;  %v756_v46 = vadd.f32 %v740_v4, %v703_v19  ;;  %v528_v49 = vmul.f32 %v979_v15, %v1290_v37  ;;  %v330_v50 = vmul.f32 %v961_v60, %v1270_v33 }
  0x73   : > { %v651_v47 = vadd.f32 %v635_v6, %v595_v26  ;;  %v543_v51 = vadd.f32 %v527_v30, %v490_v40  ;;  %v435_v56 = vadd.f32 %v419_v16, %v382_v43  ;;  %v367_v57 = vmul.f32 %v978_v9, %v1275_v34  ;;  %v982_v16 = vld [vmem:[%s1297_s18 + $0xc1] sm:$0xff] }
  0x74   : > { %v420_v59 = vmul.f32 %v995_v10, %v1280_v35  ;;  %773 = vst.msk [vmem:[%s1145_s27 + $0x40] sm:$0xff] %vm764_vm2, %v756_v46  ;;  %v689_v61 = vmul.f32 %v1318_v52, %v980_v54  ;;  %v742_v42 = vmul.f32 %v1323_v53, %v997_v55  ;;  %v581_v45 = vmul.f32 %v996_v29, %v1295_v38  ;;  %v999_v43 = vld [vmem:[%s1297_s18 + $0xc2] sm:$0xff] }
  0x75   : > { %v704_v28 = vadd.f32 %v688_v17, %v651_v47  ;;  %v596_v60 = vadd.f32 %v580_v32, %v543_v51  ;;  %v491_v62 = vadd.f32 %v475_v44, %v435_v56  ;;  %v383_v3 = vadd.f32 %v367_v57, %v330_v50  ;;  %v966_v46 = vld [vmem:[%s1297_s18 + $0xc8] sm:$0xff] }
  0x76   : > { %v476_v0 = vmul.f32 %v963_v31, %v1285_v36  ;;  %v637_v9 = vmul.f32 %v1311_v48, %v964_v63  ;;  %v529_v10 = vmul.f32 %v980_v54, %v1290_v37  ;;  %v331_v11 = vmul.f32 %v962_v7, %v1270_v33  ;;  %v998_v7 = vld [vmem:[%s1297_s18 + $0xb2] sm:$0xff] }
  0x77   : > { %v757_v8 = vadd.f32 %v741_v39, %v704_v28  ;;  %v652_v58 = vadd.f32 %v636_v41, %v596_v60  ;;  %v544_v4 = vadd.f32 %v528_v49, %v491_v62  ;;  %v436_v5 = vadd.f32 %v420_v59, %v383_v3  ;;  %v983_v59 = vld [vmem:[%s1297_s18 + $0xc9] sm:$0xff] }
  0x78   : > { %v368_v12 = vmul.f32 %v979_v15, %v1275_v34  ;;  %v690_v13 = vmul.f32 %v1318_v52, %v981_v1  ;;  %v582_v2 = vmul.f32 %v997_v55, %v1295_v38  ;;  %v421_v14 = vmul.f32 %v996_v29, %v1280_v35 }
  0x79   : > { %774 = vst.msk [vmem:[%s1145_s27 + $0x48] sm:$0xff] %vm764_vm2, %v757_v8  ;;  %v477_v6 = vmul.f32 %v964_v63, %v1285_v36  ;;  %v705_v17 = vadd.f32 %v689_v61, %v652_v58  ;;  %v597_v21 = vadd.f32 %v581_v45, %v544_v4  ;;  %v492_v18 = vadd.f32 %v476_v0, %v436_v5  ;;  %v967_v0 = vld [vmem:[%s1297_s18 + $0xd8] sm:$0xff]  ;;  %v1000_v8 = vld [vmem:[%s1297_s18 + $0xca] sm:$0xff] }
  0x7a   : > { %v384_v22 = vadd.f32 %v368_v12, %v331_v11  ;;  %v743_v15 = vmul.f32 %v1323_v53, %v998_v7  ;;  %v638_v23 = vmul.f32 %v1311_v48, %v965_v20  ;;  %v530_v25 = vmul.f32 %v981_v1, %v1290_v37  ;;  %v984_v58 = vld [vmem:[%s1297_s18 + $0xd9] sm:$0xff] }
  0x7b   : > { %v332_v24 = vmul.f32 %v963_v31, %v1270_v33  ;;  %v758_v29 = vadd.f32 %v742_v42, %v705_v17  ;;  %v653_v30 = vadd.f32 %v637_v9, %v597_v21  ;;  %v545_v27 = vadd.f32 %v529_v10, %v492_v18  ;;  %v985_v18 = vld [vmem:[%s1297_s18 + $0xe1] sm:$0xff] }
  0x7c   : > { %v437_v19 = vadd.f32 %v421_v14, %v384_v22  ;;  %v691_v26 = vmul.f32 %v1318_v52, %v982_v16  ;;  %v369_v39 = vmul.f32 %v980_v54, %v1275_v34  ;;  %v422_v32 = vmul.f32 %v997_v55, %v1280_v35  ;;  %v968_v14 = vld [vmem:[%s1297_s18 + $0xe0] sm:$0xff] }
  0x7d   : > { %775 = vst.msk [vmem:[%s1145_s27 + $0x50] sm:$0xff] %vm764_vm2, %v758_v29  ;;  %v706_v40 = vadd.f32 %v690_v13, %v653_v30  ;;  %v598_v41 = vadd.f32 %v582_v2, %v545_v27  ;;  %v583_v31 = vmul.f32 %v998_v7, %v1295_v38  ;;  %v744_v47 = vmul.f32 %v1323_v53, %v999_v43  ;;  %v1001_v2 = vld [vmem:[%s1297_s18 + $0xda] sm:$0xff] }
  0x7e   : > { %v493_v44 = vadd.f32 %v477_v6, %v437_v19  ;;  %v639_v49 = vmul.f32 %v1311_v48, %v966_v46  ;;  %v385_v50 = vadd.f32 %v369_v39, %v332_v24  ;;  %v478_v51 = vmul.f32 %v965_v20, %v1285_v36 }
  0x7f   : > { %v759_v54 = vadd.f32 %v743_v15, %v706_v40  ;;  %v654_v55 = vadd.f32 %v638_v23, %v598_v41  ;;  %v333_v57 = vmul.f32 %v964_v63, %v1270_v33  ;;  %v531_v61 = vmul.f32 %v982_v16, %v1290_v37  ;;  %v1002_v23 = vld [vmem:[%s1297_s18 + $0xe2] sm:$0xff] }
  0x80   : > { %v546_v56 = vadd.f32 %v530_v25, %v493_v44  ;;  %v438_v28 = vadd.f32 %v422_v32, %v385_v50  ;;  %v370_v42 = vmul.f32 %v981_v1, %v1275_v34  ;;  %v423_v45 = vmul.f32 %v998_v7, %v1280_v35 }
  0x81   : > { %776 = vst.msk [vmem:[%s1145_s27 + $0x58] sm:$0xff] %vm764_vm2, %v759_v54  ;;  %v707_v60 = vadd.f32 %v691_v26, %v654_v55  ;;  %v692_v3 = vmul.f32 %v1318_v52, %v983_v59  ;;  %v584_v63 = vmul.f32 %v999_v43, %v1295_v38  ;;  %v479_v10 = vmul.f32 %v966_v46, %v1285_v36 }
  0x82   : > { %v599_v62 = vadd.f32 %v583_v31, %v546_v56  ;;  %v494_v33 = vadd.f32 %v478_v51, %v438_v28  ;;  %v386_v9 = vadd.f32 %v370_v42, %v333_v57  ;;  %v745_v35 = vmul.f32 %v1323_v53, %v1000_v8 }
  0x83   : > { %v760_v34 = vadd.f32 %v744_v47, %v707_v60  ;;  %v640_v1 = vmul.f32 %v1311_v48, %v967_v0  ;;  %v532_v12 = vmul.f32 %v983_v59, %v1290_v37  ;;  %v693_v6 = vmul.f32 %v1318_v52, %v984_v58 }
  0x84   : > { %v655_v11 = vadd.f32 %v639_v49, %v599_v62  ;;  %v547_v4 = vadd.f32 %v531_v61, %v494_v33  ;;  %v439_v5 = vadd.f32 %v423_v45, %v386_v9  ;;  %v585_v21 = vmul.f32 %v1000_v8, %v1295_v38 }
  0x85   : > { %777 = vst.msk [vmem:[%s1145_s27 + $0x60] sm:$0xff] %vm764_vm2, %v760_v34  ;;  %v746_v22 = vmul.f32 %v1323_v53, %v1001_v2  ;;  %v641_v15 = vmul.f32 %v1311_v48, %v968_v14  ;;  %v694_v29 = vmul.f32 %v1318_v52, %v985_v18  ;;  %v747_v38 = vmul.f32 %v1323_v53, %v1002_v23 }
  0x86   : > { %v708_v13 = vadd.f32 %v692_v3, %v655_v11  ;;  %v600_v36 = vadd.f32 %v584_v63, %v547_v4  ;;  %v495_v17 = vadd.f32 %v479_v10, %v439_v5 }
  0x88   : > { %v761_v7 = vadd.f32 %v745_v35, %v708_v13  ;;  %v656_v20 = vadd.f32 %v640_v1, %v600_v36  ;;  %v548_v37 = vadd.f32 %v532_v12, %v495_v17 }
  0x8a   : > { %778 = vst.msk [vmem:[%s1145_s27 + $0x68] sm:$0xff] %vm764_vm2, %v761_v7  ;;  %v709_v25 = vadd.f32 %v693_v6, %v656_v20  ;;  %v601_v24 = vadd.f32 %v585_v21, %v548_v37 }
  0x8c   : > { %v762_v30 = vadd.f32 %v746_v22, %v709_v25  ;;  %v657_v27 = vadd.f32 %v641_v15, %v601_v24 }
  0x8e   : > { %779 = vst.msk [vmem:[%s1145_s27 + $0x70] sm:$0xff] %vm764_vm2, %v762_v30  ;;  %v710_v16 = vadd.f32 %v694_v29, %v657_v27 }
  0x90   : > { %v763_v19 = vadd.f32 %v747_v38, %v710_v16 }
  0x92   : > { %780 = vst.msk [vmem:[%s1145_s27 + $0x78] sm:$0xff] %vm764_vm2, %v763_v19 }
  0x93 PF: > { %s12_s13 = sadd.s32 1, %s1086_s13   ;;  %s1573_s9 = smov %s1078_s11 }
  0x94   : > { %p9_p8 = scmp.ge.s32.totalorder %s12_s13, 6   ;;  %s1574_s10 = smov %s1082_s12 }
  0x95   : > { %s1575_s11 = smov %s1578_s14  ;;  %s1576_s12 = smov %s1582_s15 }
  0x96   :  { %11 = sbr.rel (!%p9_p8) target bundleno = 3 (0x3), region = 66 }

</bundles_post_ra>
